<compile_context>
chip_gen: v5e
topology: v5e:2x2
jax: 0.10.0
libtpu: 0.0.40
codegen_flags: <defaults>
</compile_context>

<pallas_src>
import jax
import jax.numpy as jnp
from jax.experimental import pallas as pl
from jax.experimental.pallas import tpu as pltpu


def _round_up(n, m):
    return ((n + m - 1) // m) * m


def _atm_kernel(x_ref, w1t_ref, w2t_ref, o_ref):
    # x_ref:   (TM, D)  row tile of the flattened input
    # w1t_ref: (D, D)   fc1 weight, (in, out) layout -- VMEM-resident
    # w2t_ref: (D, D)   fc2 weight, (in, out) layout -- VMEM-resident
    # o_ref:   (TM, D)  output row tile
    # Native-dtype operands into the MXU; f32 accumulation.
    h = jnp.dot(x_ref[...], w1t_ref[...], preferred_element_type=jnp.float32)
    h = jnp.maximum(h, 0.0)                      # ReLU (f32)
    h = h.astype(w2t_ref.dtype)                  # no-op for f32 weights
    y = jnp.dot(h, w2t_ref[...], preferred_element_type=jnp.float32)
    o_ref[...] = jax.nn.sigmoid(y).astype(o_ref.dtype)


def atm_prepare_weights(w1, w2, dtype=None):
    """One-time parameter prep.

    Transposes PyTorch-layout (out, in) Linear weights to (in, out) so the
    kernel's hot path is two plain MXU matmuls, and optionally casts them
    (e.g. to bf16). Call this once at parameter-load time, not per forward.
    """
    w1t = jnp.asarray(w1).T
    w2t = jnp.asarray(w2).T
    if dtype is not None:
        w1t = w1t.astype(dtype)
        w2t = w2t.astype(dtype)
    return w1t, w2t


def atm_forward(x, w1t, w2t, *, tm=1024):
    """ATM forward pass.

    x        : any shape (..., D) with D == dim_in
    w1t, w2t : (D, D) weights already transposed to (in, out) layout
               (use atm_prepare_weights once on the PyTorch weights)
    tm       : row-tile size. 512-2048 hits HBM roofline on v5e/v6e/v7x while
               staying far under every generation's VMEM budget
               (f32, D=49: 4 tile buffers at TM=2048 is ~1.6 MiB).
    """
    shape = x.shape
    D = shape[-1]
    M = 1
    for s in shape[:-1]:
        M *= s
    x2d = x.reshape(M, D)

    # Clamp the tile to the (8-aligned) problem size; Pallas masks remainders.
    tm = max(8, min(int(tm), _round_up(M, 8)))
    grid_m = pl.cdiv(M, tm)

    elt_x = jnp.dtype(x2d.dtype).itemsize
    elt_w = jnp.dtype(w1t.dtype).itemsize
    cost = pl.CostEstimate(
        flops=2 * 2 * M * D * D,                 # two M x D x D matmuls
        transcendentals=M * D,                   # sigmoid
        bytes_accessed=2 * M * D * elt_x + 2 * D * D * elt_w,
    )

    out2d = pl.pallas_call(
        _atm_kernel,
        out_shape=jax.ShapeDtypeStruct((M, D), x.dtype),
        grid_spec=pltpu.PrefetchScalarGridSpec(
            num_scalar_prefetch=0,
            grid=(grid_m,),
            in_specs=[
                pl.BlockSpec((tm, D), lambda i: (i, 0)),   # row tile of x
                pl.BlockSpec((D, D), lambda i: (0, 0)),    # fc1, stays resident
                pl.BlockSpec((D, D), lambda i: (0, 0)),    # fc2, stays resident
            ],
            out_specs=pl.BlockSpec((tm, D), lambda i: (i, 0)),
        ),
        compiler_params=pltpu.CompilerParams(
            dimension_semantics=("parallel",)),            # independent row tiles
        cost_estimate=cost,
    )(x2d, w1t, w2t)

    return out2d.reshape(shape)


if __name__ == "__main__":
    dim_in = 49          # module default: 7x7 spatial attention map flattened
    B, C = 2, 4          # small leading dims; input is (B, C, dim_in)

    key = jax.random.PRNGKey(0)
    kx, k1, k2, kb = jax.random.split(key, 4)

    x = jax.random.normal(kx, (B, C, dim_in), dtype=jnp.float32)

    # Deterministic synthetic weights (PyTorch Linear layout: (out, in)),
    # scaled like the default kaiming-uniform bound 1/sqrt(in_features).
    bound = 1.0 / (dim_in ** 0.5)
    w1 = jax.random.uniform(k1, (dim_in, dim_in), jnp.float32, -bound, bound)
    w2 = jax.random.uniform(k2, (dim_in, dim_in), jnp.float32, -bound, bound)

    # one-time weight prep (transpose to (in, out))
    w1t, w2t = atm_prepare_weights(w1, w2)

    def ref_fn(inp):
        return jax.nn.sigmoid(
            jnp.maximum(inp.reshape(-1, dim_in) @ w1.T, 0.0) @ w2.T
        ).reshape(inp.shape)

    # --- test 1: small input (single tile) ---
    out = atm_forward(x, w1t, w2t)
    out = jax.block_until_ready(out)
    assert out.shape == x.shape
    assert jnp.allclose(out, ref_fn(x), atol=1e-5, rtol=1e-5)

    # --- test 2: larger input exercising the tiled grid + remainder masking ---
    xb = jax.random.normal(kb, (6, 70, dim_in), dtype=jnp.float32)  # M = 420
    outb = atm_forward(xb, w1t, w2t, tm=128)                        # grid of 4 tiles
    outb = jax.block_until_ready(outb)
    assert outb.shape == xb.shape
    assert jnp.allclose(outb, ref_fn(xb), atol=1e-5, rtol=1e-5)

    print("KERNEL_OK")
</pallas_src>

<mosaic_0001>
module attributes {stable_mosaic.version = 11 : i64} {
  func.func @_atm_kernel(%arg0: i32, %arg1: memref<8x49xf32, #tpu.memory_space<vmem>>, %arg2: memref<49x49xf32, #tpu.memory_space<vmem>>, %arg3: memref<49x49xf32, #tpu.memory_space<vmem>>, %arg4: memref<8x49xf32, #tpu.memory_space<vmem>>) attributes {dimension_semantics = [#tpu.dimension_semantics<parallel>], iteration_bounds = array<i64: 1>, scalar_prefetch = 0 : i64, scratch_operands = 0 : i64, tpu.core_type = #tpu.core_type<tc>, window_params = [{transform_indices = @transform_0, window_bounds = array<i64: 8, 49>}, {pipeline_mode = #tpu.pipeline_mode<synchronous>, transform_indices = @transform_1, window_bounds = array<i64: 49, 49>}, {pipeline_mode = #tpu.pipeline_mode<synchronous>, transform_indices = @transform_2, window_bounds = array<i64: 49, 49>}, {transform_indices = @transform_3, window_bounds = array<i64: 8, 49>}]} {
    %c0 = arith.constant 0 : index
    %c0_0 = arith.constant 0 : index
    %0 = vector.load %arg1[%c0, %c0_0] : memref<8x49xf32, #tpu.memory_space<vmem>>, vector<8x49xf32>
    %c0_1 = arith.constant 0 : index
    %c0_2 = arith.constant 0 : index
    %1 = vector.load %arg2[%c0_1, %c0_2] : memref<49x49xf32, #tpu.memory_space<vmem>>, vector<49x49xf32>
    %cst = arith.constant dense<0.000000e+00> : vector<8x49xf32>
    %2 = tpu.matmul %0, %1, %cst {dimension_numbers = #tpu.dot_dimension_numbers<[1], [0], [0], [1], [0, 0, 1, 1], [], []>} : vector<8x49xf32>, vector<49x49xf32>, vector<8x49xf32> -> vector<8x49xf32>
    %cst_3 = arith.constant 0.000000e+00 : f32
    %3 = vector.broadcast %cst_3 : f32 to vector<8x49xf32>
    %4 = arith.maximumf %2, %3 : vector<8x49xf32>
    %c0_4 = arith.constant 0 : index
    %c0_5 = arith.constant 0 : index
    %5 = vector.load %arg3[%c0_4, %c0_5] : memref<49x49xf32, #tpu.memory_space<vmem>>, vector<49x49xf32>
    %cst_6 = arith.constant dense<0.000000e+00> : vector<8x49xf32>
    %6 = tpu.matmul %4, %5, %cst_6 {dimension_numbers = #tpu.dot_dimension_numbers<[1], [0], [0], [1], [0, 0, 1, 1], [], []>} : vector<8x49xf32>, vector<49x49xf32>, vector<8x49xf32> -> vector<8x49xf32>
    %7 = arith.negf %6 : vector<8x49xf32>
    %8 = math.exp %7 : vector<8x49xf32>
    %cst_7 = arith.constant 1.000000e+00 : f32
    %9 = vector.broadcast %cst_7 : f32 to vector<8x49xf32>
    %10 = arith.addf %9, %8 : vector<8x49xf32>
    %11 = arith.divf %9, %10 : vector<8x49xf32>
    %c0_8 = arith.constant 0 : index
    %c0_9 = arith.constant 0 : index
    %12 = vector.load %arg4[%c0_8, %c0_9] : memref<8x49xf32, #tpu.memory_space<vmem>>, vector<8x49xf32>
    tpu.vector_store %arg4[%c0_8, %c0_9], %11 {strides = array<i32>} : memref<8x49xf32, #tpu.memory_space<vmem>>, vector<8x49xf32>,
    return
  }
  func.func @transform_0(%arg0: i32) -> (i32, i32) {
    %c0_i32 = arith.constant 0 : i32
    %c0_i32_0 = arith.constant 0 : i32
    return %arg0, %c0_i32 : i32, i32
  }
  func.func @transform_1(%arg0: i32) -> (i32, i32) {
    %c0_i32 = arith.constant 0 : i32
    %c0_i32_0 = arith.constant 0 : i32
    %c0_i32_1 = arith.constant 0 : i32
    return %c0_i32, %c0_i32_0 : i32, i32
  }
  func.func @transform_2(%arg0: i32) -> (i32, i32) {
    %c0_i32 = arith.constant 0 : i32
    %c0_i32_0 = arith.constant 0 : i32
    %c0_i32_1 = arith.constant 0 : i32
    return %c0_i32, %c0_i32_0 : i32, i32
  }
  func.func @transform_3(%arg0: i32) -> (i32, i32) {
    %c0_i32 = arith.constant 0 : i32
    %c0_i32_0 = arith.constant 0 : i32
    return %arg0, %c0_i32 : i32, i32
  }
}

</mosaic_0001>

<bundles_post_ra>
// kernel: tpu_custom_call.1
= control target key start
LH: loop header
LB: loop body
LE: loop exit
PB: predicated region body
PF: predicated region fallthrough
CT: control target
= control target key end

     0   :  { %8 = vsyncpa [#allocation3], 0  ;;  %s326_s0 = inlined_call_operand.hbm [shape: f32[8,49], index: 0, kind: input, shape index: {}]   ;;  %s327_s1 = inlined_call_operand.hbm [shape: f32[49,49], index: 1, kind: input, shape index: {}]   ;;  %s328_s2 = inlined_call_operand.hbm [shape: f32[49,49], index: 2, kind: input, shape index: {}]   ;;  %s329_s3 = inlined_call_operand.hbm [shape: f32[8,49], index: 3, kind: output, shape index: {}]  }
   0x1   :  { %9 = vsyncpa [#allocation6], 0  ;;  %s26_s14 = sshll.u32 %s327_s1, 4  ;;  %s27_s14 = int_to_ptr.hbm [resolvable:$true] %s26_s14 }
   0x2   :  { %10 = vsyncpa [#allocation4], 0  ;;  %s285_s15 = smov [#allocation5]   ;;  %s16_s19 = sshll.u32 %s326_s0, 4  ;;  %s17_s19 = int_to_ptr.hbm [resolvable:$true] %s16_s19 }
   0x3   :  { %s28_s16 = sshll.u32 %s285_s15, 4  ;;  %s286_s20 = smov 128   ;;  %s29_s16 = int_to_ptr.vmem [resolvable:$true] %s28_s16 }
   0x4   :  { %s287_s21 = smov 8   ;;  %s288_s22 = smov [#allocation2]  }
   0x5   :  { %34 = dma.hbm_to_vmem [thread:$0]  %s27_s14, 896, %s29_s16, [#allocation6], %s286_s20, %s286_s20, %s287_s21  }
   0x6   :  { %s18_s23 = sshll.u32 %s288_s22, 4  ;;  %s39_s26 = sshll.u32 %s328_s2, 4  ;;  %s19_s23 = int_to_ptr.vmem [resolvable:$true] %s18_s23  ;;  %s40_s26 = int_to_ptr.hbm [resolvable:$true] %s39_s26 }
   0x7   :  { %21 = dma.hbm_to_vmem [thread:$0]  %s17_s19, 128, %s19_s23, [#allocation3]  }
   0x8   :  { %s289_s1 = smov [#allocation7]  }
   0x9   :  { %s41_s27 = sshll.u32 %s289_s1, 4  ;;  %s42_s27 = int_to_ptr.vmem [resolvable:$true] %s41_s27 }
   0xa   :  { %47 = dma.hbm_to_vmem [thread:$0]  %s40_s26, 896, %s42_s27, [#allocation6], %s286_s20, %s286_s20, %s287_s21  }
   0xb   :  { %279 = dma.done.wait [#allocation3], 128  }
   0xc   :  { %280 = vsyncadd [#allocation3], 4294967168 }
   0xd   :  { %281 = dma.done.wait [#allocation6], 1792  }
   0xe   :  { %282 = vsyncadd [#allocation6], 4294965504  ;;  %vm72_vm0 = vcmask 1040384   ;;  %v67_v0 = vld [vmem:[#allocation5 + $0x30] sm:$0x1]  ;;  %v66_v1 = vld [vmem:[#allocation5 + $0x28] sm:$0xff] }
   0xf   :  { %168 = vmatpush.msk.msra.mxu0 %vm72_vm0, %v67_v0  ;;  %v65_v2 = vld [vmem:[#allocation5 + $0x20] sm:$0xff]  ;;  %v103_v3 = vld [vmem:[#allocation7 + $0x30] sm:$0x1]  ;;  %v64_v5 = vld [vmem:[#allocation5 + $0x18] sm:$0xff]  ;;  %vm68_vm1 = vcmask 400384   ;;  %s290_s0 = smov [#allocation8]  }
  0x10   :  { %170 = vmatpush.msk.msra.mxu1 %vm72_vm0, %v103_v3  ;;  %v102_v4 = vld [vmem:[#allocation7 + $0x28] sm:$0xff]  ;;  %v101_v6 = vld [vmem:[#allocation7 + $0x20] sm:$0xff]  ;;  %v63_v7 = vld [vmem:[#allocation5 + $0x10] sm:$0xff]  ;;  %s155_s2 = sshll.u32 %s290_s0, 4  ;;  %s157_s30 = sshll.u32 %s329_s3, 4  ;;  %s156_s2 = int_to_ptr.vmem [resolvable:$true] %s155_s2  ;;  %s158_s30 = int_to_ptr.hbm [resolvable:$true] %s157_s30 }
  0x11   :  { %86 = vmatpush.msra.mxu0 %v66_v1  ;;  %v100_v8 = vld [vmem:[#allocation7 + $0x18] sm:$0xff]  ;;  %v62_v9 = vld [vmem:[#allocation5 + $0x8] sm:$0xff]  ;;  %v61_v11 = vld [vmem:[#allocation5] sm:$0xff] }
  0x12   :  { %120 = vmatpush.msra.mxu1 %v102_v4  ;;  %v99_v10 = vld [vmem:[#allocation7 + $0x10] sm:$0xff]  ;;  %v60_v12 = vld [vmem:[#allocation2] sm:$0xff]  ;;  %v98_v13 = vld [vmem:[#allocation7 + $0x8] sm:$0xff] }
  0x13   :  { %87 = vmatpush.msra.mxu0 %v65_v2  ;;  %v97_v14 = vld [vmem:[#allocation7] sm:$0xff] }
  0x14   :  { %121 = vmatpush.msra.mxu1 %v101_v6 }
  0x15   :  { %88 = vmatpush.msra.mxu0 %v64_v5 }
  0x16   :  { %122 = vmatpush.msra.mxu1 %v100_v8 }
  0x17   :  { %89 = vmatpush.msra.mxu0 %v63_v7 }
  0x18   :  { %123 = vmatpush.msra.mxu1 %v99_v10 }
  0x19   :  { %90 = vmatpush.msra.mxu0 %v62_v9 }
  0x1a   :  { %124 = vmatpush.msra.mxu1 %v98_v13 }
  0x1b   :  { %91 = vmatpush.msra.mxu0 %v61_v11 }
  0x1c   :  { %169 = vmatmul.msk.f32.vlgmr.msra.gmra.mxu0 %vm68_vm1, %v60_v12  ;;  %125 = vmatpush.msra.mxu1 %v97_v14 }
  0x99   :  { %v93_v15 = vpop.f32.mrf.mxu0 }
  0x9a   :  { %v96_v16 = vmax.f32 %v93_v15, 0.0 }
  0x9c   :  { %171 = vmatmul.msk.f32.vlgmr.msra.gmra.mxu1 %vm68_vm1, %v96_v16 }
 0x119   :  { %v127_v17 = vpop.f32.mrf.mxu1 }
 0x11a   :  { %v172_v18 = vmul.f32 -1.442695, %v127_v17 }
 0x11c   :  { %179 = vpow2.f32 %v172_v18 }
 0x122   :  { %v180_v19 = vpop.eup %179 }
 0x123   :  { %v133_v20 = vadd.f32 1.0, %v180_v19 }
 0x125   :  { %181 = vrcp.f32 %v133_v20  ;;  %v145_v24 = vand.u32 2147483648, %v133_v20  ;;  %v143_v26 = vand.u32 2147483647, %v133_v20  ;;  %vm139_vm3 = vweird.f32 %v133_v20 }
 0x127   :  { %v146_v28 = vor.u32 1.1754944e-38, %v145_v24  ;;  %vm144_vm5 = vcmp.eq.f32.partialorder %v143_v26, 8.507059e+37 }
 0x12b   :  { %v182_v21 = vpop.eup %181 }
 0x12c   :  { %v135_v22 = vmul.f32 %v182_v21, %v133_v20  ;;  %vm140_vm2 = vweird.f32 %v182_v21 }
 0x12d   :  { %vm141_vm4 = vmor %vm139_vm3, %vm140_vm2 }
 0x12e   :  { %v136_v23 = vsub.f32 1.0, %v135_v22 }
 0x130   :  { %v137_v25 = vmul.f32 %v182_v21, %v136_v23 }
 0x132   :  { %v138_v27 = vadd.f32 %v182_v21, %v137_v25 }
 0x134   :  { %v142_v29 = vsel %vm141_vm4, %v182_v21, %v138_v27 }
 0x135   :  { %v147_v30 = vsel %vm144_vm5, %v146_v28, %v142_v29 }
 0x136   :  { %149 = vst.msk [vmem:[#allocation8] sm:$0xff] %vm68_vm1, %v147_v30 }
 0x137   :  { %160 = dma.vmem_to_hbm [thread:$0]  %s156_s2, 128, %s158_s30, [#allocation4]  }
 0x138   :  { %283 = dma.done.wait [#allocation4], 128  }
 0x139   :  { %284 = vsyncadd [#allocation4], 4294967168 }
 0x13a   :  { %165 = vsyncpa [#allocation3], 1 }
 0x13b   :  { %166 = vsyncpa [#allocation6], 1 }
 0x13c   :  { %167 = vsyncpa [#allocation4], 1 }

</bundles_post_ra>
